<compile_context>
chip_gen: v7x
topology: tpu7x:2x2x1
jax: 0.10.0
libtpu: 0.0.40
codegen_flags: <defaults>
</compile_context>

<pallas_src>
import functools

import jax
import jax.numpy as jnp
from jax.experimental import pallas as pl
from jax.experimental.pallas import tpu as pltpu


def _cca_kernel(x_ref, w1t_ref, b1_ref, w2t_ref, b2_ref, o_ref, *, inv_hw):
    # x_ref block: (NB, Cp, HWp)
    xb = x_ref[...]                                   # native dtype (f32/bf16)
    xf = xb.astype(jnp.float32)

    # Fused single-pass stats: sum and sum-of-squares over spatial lanes.
    # Zero padding on the spatial axis contributes 0 to both sums, so dividing
    # by the *original* H*W (inv_hw) keeps mean/var exact.
    s1 = jnp.sum(xf, axis=-1)                         # (NB, Cp)
    s2 = jnp.sum(xf * xf, axis=-1)                    # (NB, Cp)
    mean = s1 * inv_hw
    var = jnp.maximum(s2 * inv_hw - mean * mean, 0.0)  # clamp rounding negatives
    y = jnp.sqrt(var) + mean                          # contrast + avg_pool, (NB, Cp)

    # conv_du as lane-major channel MLP (weights pre-transposed in the wrapper).
    h = jnp.dot(y, w1t_ref[...], preferred_element_type=jnp.float32) + b1_ref[...]
    h = jnp.maximum(h, 0.0)                           # (NB, Crp)
    s = jnp.dot(h, w2t_ref[...], preferred_element_type=jnp.float32) + b2_ref[...]
    s = jax.nn.sigmoid(s)                             # (NB, Cp)

    # x * y: broadcast attention weights over the spatial (lane) axis.
    # Multiply in the input dtype (bf16 stays bf16 on v6e/v7x); store once.
    o_ref[...] = (xb * s.astype(xb.dtype)[:, :, None]).astype(o_ref.dtype)


def cca_layer(x, w1, b1, w2, b2, *, target_block_bytes=2 << 20):
    """CCALayer forward.

    x: (N, C, H, W); w1: (Cr, C); b1: (Cr, 1); w2: (C, Cr); b2: (C, 1).
    """
    N, C, H, W = x.shape
    HW = H * W
    Cr = w1.shape[0]
    itemsize = jnp.dtype(x.dtype).itemsize

    # Lane/sublane-friendly padded sizes.
    HWp = max(128, -(-HW // 128) * 128)
    Cp = max(8, -(-C // 8) * 8)
    Crp = max(8, -(-Cr // 8) * 8)

    # Samples per grid step: aim for MiB-scale blocks (mem-bound kernel, per-step
    # overhead ~0.35us), but keep >= 2 grid steps when N allows so the parallel
    # axis can shard across v7x's two TensorCores.
    bytes_per_sample = Cp * HWp * itemsize
    NB = int(max(1, min(N, target_block_bytes // bytes_per_sample)))
    if N >= 2:
        NB = min(NB, max(1, N // 2))
    Np = -(-N // NB) * NB

    xf = x.reshape(N, C, HW)
    if (Np, Cp, HWp) != (N, C, HW):
        # Zero padding is inert: padded lanes/channels/samples produce zero
        # output and are sliced off below.
        xf = jnp.pad(xf, ((0, Np - N), (0, Cp - C), (0, HWp - HW)))

    # Pre-transposed, lane-major MLP parameters (zero-padded).
    w1t = jnp.pad(w1.astype(jnp.float32).T, ((0, Cp - C), (0, Crp - Cr)))      # (Cp, Crp)
    w2t = jnp.pad(w2.astype(jnp.float32).T, ((0, Crp - Cr), (0, Cp - C)))      # (Crp, Cp)
    b1l = jnp.pad(b1.astype(jnp.float32).reshape(1, Cr), ((0, 0), (0, Crp - Cr)))  # (1, Crp)
    b2l = jnp.pad(b2.astype(jnp.float32).reshape(1, C), ((0, 0), (0, Cp - C)))     # (1, Cp)

    grid = (Np // NB,)

    # Explicit VMEM budget: double-buffered x block + output block + params,
    # plus headroom; clamped so it also fits v7x's 64 MiB physical VMEM.
    block_bytes = NB * Cp * HWp * itemsize
    vmem_need = 4 * block_bytes + 4 * (2 * Cp * Crp + Cp + Crp) * 4 + (4 << 20)
    vmem_limit = int(min(48 << 20, max(vmem_need, 24 << 20)))

    out = pl.pallas_call(
        functools.partial(_cca_kernel, inv_hw=1.0 / HW),
        out_shape=jax.ShapeDtypeStruct((Np, Cp, HWp), x.dtype),
        grid_spec=pltpu.PrefetchScalarGridSpec(
            num_scalar_prefetch=0,
            grid=grid,
            in_specs=[
                pl.BlockSpec((NB, Cp, HWp), lambda n: (n, 0, 0)),
                pl.BlockSpec((Cp, Crp), lambda n: (0, 0)),
                pl.BlockSpec((1, Crp), lambda n: (0, 0)),
                pl.BlockSpec((Crp, Cp), lambda n: (0, 0)),
                pl.BlockSpec((1, Cp), lambda n: (0, 0)),
            ],
            out_specs=pl.BlockSpec((NB, Cp, HWp), lambda n: (n, 0, 0)),
        ),
        compiler_params=pltpu.CompilerParams(
            dimension_semantics=("parallel",),
            vmem_limit_bytes=vmem_limit,
        ),
    )(xf, w1t, b1l, w2t, b2l)

    return out[:N, :C, :HW].reshape(N, C, H, W)


def cca_ref(x, w1, b1, w2, b2):
    """Pure-JAX reference matching the PyTorch forward (population std)."""
    mean = jnp.mean(x, axis=(2, 3), keepdims=True)
    var = jnp.mean((x - mean) ** 2, axis=(2, 3), keepdims=True)
    y = jnp.sqrt(var) + mean                                # (N, C, 1, 1)
    yv = y[:, :, 0, 0]                                      # (N, C)
    h = jnp.maximum(yv @ w1.T + b1[:, 0], 0.0)              # (N, Cr)
    s = jax.nn.sigmoid(h @ w2.T + b2[:, 0])                 # (N, C)
    return x * s[:, :, None, None]


if __name__ == "__main__":
    N, C, H, W = 2, 32, 16, 16
    reduction = 16
    Cr = C // reduction

    key = jax.random.PRNGKey(0)
    kx, kw1, kb1, kw2, kb2 = jax.random.split(key, 5)

    x = jax.random.normal(kx, (N, C, H, W), dtype=jnp.float32)
    # 1x1 conv weights are just (out, in) matrices; biases (out, 1).
    w1 = jax.random.normal(kw1, (Cr, C), dtype=jnp.float32) * 0.1
    b1 = jax.random.normal(kb1, (Cr, 1), dtype=jnp.float32) * 0.1
    w2 = jax.random.normal(kw2, (C, Cr), dtype=jnp.float32) * 0.1
    b2 = jax.random.normal(kb2, (C, 1), dtype=jnp.float32) * 0.1

    out = cca_layer(x, w1, b1, w2, b2)
    out = jax.block_until_ready(out)

    ref = cca_ref(x, w1, b1, w2, b2)
    assert out.shape == (N, C, H, W)
    assert jnp.allclose(out, ref, atol=2e-5, rtol=2e-5), "mismatch vs reference"

    print("KERNEL_OK")
</pallas_src>

<mosaic_0001>
module attributes {stable_mosaic.version = 11 : i64} {
  func.func @_cca_kernel(%arg0: i32, %arg1: memref<1x32x256xf32, #tpu.memory_space<vmem>>, %arg2: memref<32x8xf32, #tpu.memory_space<vmem>>, %arg3: memref<1x8xf32, #tpu.memory_space<vmem>>, %arg4: memref<8x32xf32, #tpu.memory_space<vmem>>, %arg5: memref<1x32xf32, #tpu.memory_space<vmem>>, %arg6: memref<1x32x256xf32, #tpu.memory_space<vmem>>) attributes {dimension_semantics = [#tpu.dimension_semantics<parallel>], iteration_bounds = array<i64: 2>, scalar_prefetch = 0 : i64, scratch_operands = 0 : i64, tpu.core_type = #tpu.core_type<tc>, window_params = [{transform_indices = @transform_0, window_bounds = array<i64: 1, 32, 256>}, {pipeline_mode = #tpu.pipeline_mode<synchronous>, transform_indices = @transform_1, window_bounds = array<i64: 32, 8>}, {pipeline_mode = #tpu.pipeline_mode<synchronous>, transform_indices = @transform_2, window_bounds = array<i64: 1, 8>}, {pipeline_mode = #tpu.pipeline_mode<synchronous>, transform_indices = @transform_3, window_bounds = array<i64: 8, 32>}, {pipeline_mode = #tpu.pipeline_mode<synchronous>, transform_indices = @transform_4, window_bounds = array<i64: 1, 32>}, {transform_indices = @transform_5, window_bounds = array<i64: 1, 32, 256>}]} {
    %c0 = arith.constant 0 : index
    %c0_0 = arith.constant 0 : index
    %c0_1 = arith.constant 0 : index
    %0 = vector.load %arg1[%c0, %c0_0, %c0_1] : memref<1x32x256xf32, #tpu.memory_space<vmem>>, vector<1x32x256xf32>
    %cst = arith.constant dense<0.000000e+00> : vector<1x32xf32>
    %1 = vector.multi_reduction <add>, %0, %cst [2] : vector<1x32x256xf32> to vector<1x32xf32>
    %2 = arith.mulf %0, %0 : vector<1x32x256xf32>
    %cst_2 = arith.constant dense<0.000000e+00> : vector<1x32xf32>
    %3 = vector.multi_reduction <add>, %2, %cst_2 [2] : vector<1x32x256xf32> to vector<1x32xf32>
    %cst_3 = arith.constant 3.906250e-03 : f32
    %4 = vector.broadcast %cst_3 : f32 to vector<1x32xf32>
    %5 = arith.mulf %1, %4 : vector<1x32xf32>
    %cst_4 = arith.constant 3.906250e-03 : f32
    %6 = vector.broadcast %cst_4 : f32 to vector<1x32xf32>
    %7 = arith.mulf %3, %6 : vector<1x32xf32>
    %8 = arith.mulf %5, %5 : vector<1x32xf32>
    %9 = arith.subf %7, %8 : vector<1x32xf32>
    %cst_5 = arith.constant 0.000000e+00 : f32
    %10 = vector.broadcast %cst_5 : f32 to vector<1x32xf32>
    %11 = arith.maximumf %9, %10 : vector<1x32xf32>
    %12 = math.sqrt %11 : vector<1x32xf32>
    %13 = arith.addf %12, %5 : vector<1x32xf32>
    %c0_6 = arith.constant 0 : index
    %c0_7 = arith.constant 0 : index
    %14 = vector.load %arg2[%c0_6, %c0_7] : memref<32x8xf32, #tpu.memory_space<vmem>>, vector<32x8xf32>
    %cst_8 = arith.constant dense<0.000000e+00> : vector<1x8xf32>
    %15 = tpu.matmul %13, %14, %cst_8 {dimension_numbers = #tpu.dot_dimension_numbers<[1], [0], [0], [1], [0, 0, 1, 1], [], []>} : vector<1x32xf32>, vector<32x8xf32>, vector<1x8xf32> -> vector<1x8xf32>
    %c0_9 = arith.constant 0 : index
    %c0_10 = arith.constant 0 : index
    %16 = vector.load %arg3[%c0_9, %c0_10] : memref<1x8xf32, #tpu.memory_space<vmem>>, vector<1x8xf32>
    %17 = arith.addf %15, %16 : vector<1x8xf32>
    %cst_11 = arith.constant 0.000000e+00 : f32
    %18 = vector.broadcast %cst_11 : f32 to vector<1x8xf32>
    %19 = arith.maximumf %17, %18 : vector<1x8xf32>
    %c0_12 = arith.constant 0 : index
    %c0_13 = arith.constant 0 : index
    %20 = vector.load %arg4[%c0_12, %c0_13] : memref<8x32xf32, #tpu.memory_space<vmem>>, vector<8x32xf32>
    %cst_14 = arith.constant dense<0.000000e+00> : vector<1x32xf32>
    %21 = tpu.matmul %19, %20, %cst_14 {dimension_numbers = #tpu.dot_dimension_numbers<[1], [0], [0], [1], [0, 0, 1, 1], [], []>} : vector<1x8xf32>, vector<8x32xf32>, vector<1x32xf32> -> vector<1x32xf32>
    %c0_15 = arith.constant 0 : index
    %c0_16 = arith.constant 0 : index
    %22 = vector.load %arg5[%c0_15, %c0_16] : memref<1x32xf32, #tpu.memory_space<vmem>>, vector<1x32xf32>
    %23 = arith.addf %21, %22 : vector<1x32xf32>
    %24 = arith.negf %23 : vector<1x32xf32>
    %25 = math.exp %24 : vector<1x32xf32>
    %cst_17 = arith.constant 1.000000e+00 : f32
    %26 = vector.broadcast %cst_17 : f32 to vector<1x32xf32>
    %27 = arith.addf %26, %25 : vector<1x32xf32>
    %28 = arith.divf %26, %27 : vector<1x32xf32>
    %29 = vector.shape_cast %28 : vector<1x32xf32> to vector<1x32x1xf32>
    %30 = vector.broadcast %29 : vector<1x32x1xf32> to vector<1x32x256xf32>
    %31 = arith.mulf %0, %30 : vector<1x32x256xf32>
    %c0_18 = arith.constant 0 : index
    %c0_19 = arith.constant 0 : index
    %c0_20 = arith.constant 0 : index
    %32 = vector.load %arg6[%c0_18, %c0_19, %c0_20] : memref<1x32x256xf32, #tpu.memory_space<vmem>>, vector<1x32x256xf32>
    tpu.vector_store %arg6[%c0_18, %c0_19, %c0_20], %31 {strides = array<i32>} : memref<1x32x256xf32, #tpu.memory_space<vmem>>, vector<1x32x256xf32>,
    return
  }
  func.func @transform_0(%arg0: i32) -> (i32, i32, i32) {
    %c0_i32 = arith.constant 0 : i32
    %c0_i32_0 = arith.constant 0 : i32
    %c0_i32_1 = arith.constant 0 : i32
    return %arg0, %c0_i32, %c0_i32_0 : i32, i32, i32
  }
  func.func @transform_1(%arg0: i32) -> (i32, i32) {
    %c0_i32 = arith.constant 0 : i32
    %c0_i32_0 = arith.constant 0 : i32
    %c0_i32_1 = arith.constant 0 : i32
    return %c0_i32, %c0_i32_0 : i32, i32
  }
  func.func @transform_2(%arg0: i32) -> (i32, i32) {
    %c0_i32 = arith.constant 0 : i32
    %c0_i32_0 = arith.constant 0 : i32
    %c0_i32_1 = arith.constant 0 : i32
    return %c0_i32, %c0_i32_0 : i32, i32
  }
  func.func @transform_3(%arg0: i32) -> (i32, i32) {
    %c0_i32 = arith.constant 0 : i32
    %c0_i32_0 = arith.constant 0 : i32
    %c0_i32_1 = arith.constant 0 : i32
    return %c0_i32, %c0_i32_0 : i32, i32
  }
  func.func @transform_4(%arg0: i32) -> (i32, i32) {
    %c0_i32 = arith.constant 0 : i32
    %c0_i32_0 = arith.constant 0 : i32
    %c0_i32_1 = arith.constant 0 : i32
    return %c0_i32, %c0_i32_0 : i32, i32
  }
  func.func @transform_5(%arg0: i32) -> (i32, i32, i32) {
    %c0_i32 = arith.constant 0 : i32
    %c0_i32_0 = arith.constant 0 : i32
    %c0_i32_1 = arith.constant 0 : i32
    return %arg0, %c0_i32, %c0_i32_0 : i32, i32, i32
  }
}

</mosaic_0001>

<bundles_post_ra>
// kernel: tpu_custom_call.1
= control target key start
LH: loop header
LB: loop body
LE: loop exit
PB: predicated region body
PF: predicated region fallthrough
CT: control target
= control target key end

     0   :  { %10 = vsyncpa [#allocation3], 0  ;;  %s1151_s0 = inlined_call_operand.hbm [shape: f32[2,32,256], index: 0, kind: input, shape index: {}]   ;;  %s1152_s1 = inlined_call_operand.vmem [shape: f32[32,8], index: 1, kind: input, shape index: {}]   ;;  %s1153_s2 = inlined_call_operand.vmem [shape: f32[1,8], index: 2, kind: input, shape index: {}]   ;;  %s1154_s3 = inlined_call_operand.vmem [shape: f32[8,32], index: 3, kind: input, shape index: {}]   ;;  %s1155_s4 = inlined_call_operand.vmem [shape: f32[1,32], index: 4, kind: input, shape index: {}]   ;;  %s1156_s5 = inlined_call_operand.hbm [shape: f32[2,32,256], index: 5, kind: output, shape index: {}]  }
   0x1   :  { %12 = vsyncpa [#allocation3 + $0x1], 0 }
   0x2   :  { %13 = vsyncpa [#allocation4], 0 }
   0x3   :  { %15 = vsyncpa [#allocation4 + $0x1], 0  ;;  %s899_s18 = smov 0   ;;  %s901_s19 = smov 0  }
   0x4   :  { %s903_s20 = smov 0   ;;  %s905_s21 = smov 0  }
   0x5 LB: > { %s920_s22 = sadd.s32 4294967295, %s858_s21   ;;  %s649_s23 = sadd.s32 4294967294, %s858_s21   ;;  %s858_s21 = sphi %s905_s21, %s1169_s21   ;;  %s854_s20 = sphi %s903_s20, %s1168_s20   ;;  %s850_s19 = sphi %s901_s19, %s1167_s19   ;;  %s846_s18 = sphi %s899_s18, %s1166_s18  }
   0x6   : > { %s924_s24 = sadd.s32 1, %s858_s21   ;;  %s28_s25 = sadd.s32 1, %s854_s20 }
   0x7   : > { %s25_s26 = ssub.s32 %s858_s21, %s924_s24  ;;  %p35_p0 = scmp.ne.s32.totalorder %s854_s20, %s850_s19 }
   0x8   : > { %p26_p1 = scmp.eq.s32.totalorder %s25_s26, 0  ;;  %p36_p2 = scmp.eq.s32.totalorder %s858_s21, 0 }
   0x9   : > { %p41_p3 = scmp.ne.s32.totalorder %s850_s19, %s846_s18  ;;  %p42_p4 = scmp.eq.s32.totalorder %s920_s22, 0 }
   0xa   : > { %s936_s27 = scalar_select %p26_p1, %s854_s20, %s28_s25  }
   0xb   : > { %p938_p5 = por %p36_p2, %p35_p0  ;;  %p942_p6 = por %p42_p4, %p41_p3 }
   0xc   : > { %p149_p7 = scmp.eq.s32.totalorder %s920_s22, 1  ;;  %p155_p8 = scmp.eq.s32.totalorder %s649_s23, 1 }
   0xd   : > { %p709_p10 = scmp.lt.s32.totalorder %s858_s21, 2  ;;  %s187_s7 = sand.u32 1, %s854_s20  }
   0xe   : > { %p949_p11 = por %p149_p7, %p35_p0  ;;  %p953_p12 = por %p155_p8, %p41_p3 }
   0xf   : > { %s666_s8 = sshll.u32 %s858_s21, 10  ;;  %s652_s9 = sshll.u32 %s187_s7, 6 }
  0x10   : > { %s1160_s30 = scalar_select %p949_p11, 1, 0 }
  0x11   : > { %s1161_s6 = scalar_select %p953_p12, 1, 0 }
  0x12   : > { %s962_s12 = scalar_lea.hbm %s1151_s0, %s666_s8  ;;  %s191_s13 = scalar_lea.vmem [#allocation2], %s652_s9 }
  0x13   : > { %s198_s14 = sshll.u32 %s191_s13, 4  ;;  %p966_p13 = pnand %p709_p10, %p938_p5  ;;  %s970_s14 = int_to_ptr.vmem [resolvable:$true] %s198_s14 }
  0x14   : > { %s972_s16 = scalar_lea.sflag [#allocation3], %s187_s7  ;;  %s762_s17 = scalar_lea.hbm %s962_s12, 1024 }
  0x15   : > { %p763_p0 = scmp.ne.s32.totalorder %s962_s12, %s762_s17  ;;  %p764_p1 = pneg %p966_p13 }
  0x16   : > { %s767_s26 = scalar_lea.hbm %s1151_s0, 2048  ;;  %p768_p4 = scmp.lt.u32.totalorder %s962_s12, %s1151_s0 }
  0x17   : > { %p765_p2 = pnand %p764_p1, %p763_p0  ;;  %p769_p5 = scmp.lt.u32.totalorder %s767_s26, %s762_s17 }
  0x18   : > { %p771_p8 = scmp.lt.u32.totalorder %s762_s17, %s962_s12 }
  0x19   : > { %p766_p3 = pneg %p765_p2  ;;  %p770_p7 = por %p769_p5, %p768_p4 }
  0x1b   : > { %p772_p10 = por %p771_p8, %p770_p7 }
  0x1d   : > { %p773_p9 = pnand %p772_p10, %p766_p3 }
  0x1f   : > { %776 = shalt.err (!%p773_p9)
}
  0x20   : > { %s777_s7 = scalar_lea.vmem %s970_s14, 1024  ;;  %s860_s9 = smov [#allocation2]  }
  0x21   : > { %p778_p0 = scmp.ne.s32.totalorder %s970_s14, %s777_s7  ;;  %s782_s10 = sshll.u32 %s860_s9, 4  ;;  %s783_s10 = int_to_ptr.vmem [resolvable:$false] %s782_s10 }
  0x22   : > { %s784_s11 = scalar_lea.vmem %s783_s10, 2048  ;;  %p785_p11 = scmp.lt.s32.totalorder %s970_s14, %s783_s10 }
  0x23   : > { %p780_p2 = pnand %p778_p0, %p764_p1  ;;  %p786_p4 = scmp.lt.s32.totalorder %s784_s11, %s777_s7 }
  0x25   : > { %p781_p12 = pneg %p780_p2  ;;  %p787_p5 = por %p786_p4, %p785_p11 }
  0x27   : > { %p788_p7 = pnand %p787_p5, %p781_p12 }
  0x29   : > { %791 = shalt.err (!%p788_p7)
}
  0x2a   : > { %s861_s13 = smov 256   ;;  %s862_s17 = smov 16  }
  0x2b   : > { %704 = dma.hbm_to_vmem [thread:$0]  (!%p966_p13), %s962_s12, 1024, %s970_s14, %s972_s16, %s861_s13, %s861_s13, %s862_s17  }
  0x2c   : > { %p655_p9 = scmp.ge.s32.totalorder %s858_s21, 1  ;;  %p206_p1 = scmp.lt.s32.totalorder %s858_s21, 3 }
  0x2e   : > { %p207_p3 = pnand %p655_p9, %p206_p1 }
  0x2f   : > { %s1003_s23 = sand.u32 (!%p207_p3), 1, %s850_s19  }
  0x30   : > { %210 = sbr.rel (%p207_p3) target bundleno = 839 (0x347), region = 40  ;;  %s656_s25 = sshll.u32 (!%p207_p3), %s1003_s23, 6 }
  0x31   : > { %s213_s26 = scalar_lea.sflag (!%p207_p3), [#allocation3], %s1003_s23  ;;  %s216_s28 = scalar_lea.vmem (!%p207_p3), [#allocation2], %s656_s25 }
  0x37   : > { %837 = dma.done.wait (%p942_p6), %s213_s26, 1024  }
  0x38   : > { %839 = vsyncadd (%p942_p6), %s213_s26, 4294966272  ;;  %v1013_v0 = vld [vmem:[%s216_s28 + $0x20] sm:$0xff]  ;;  %v1015_v1 = vld [vmem:[%s216_s28 + $0x28] sm:$0xff]  ;;  %v863_v27 = vmov 0.0|0.0   ;;  %vm864_vm0 = vmmov 0   ;;  %v865_v30 = vmov 0.0   ;;  %v344_v57 = vlaneseq }
  0x39   : > { %v1017_v2 = vld [vmem:[%s216_s28] sm:$0xff]  ;;  %v257_v3 = vadd.f32 %v1015_v1, %v1013_v0  ;;  %v1021_v4 = vld [vmem:[%s216_s28 + $0x8] sm:$0xff]  ;;  %v1023_v5 = vld [vmem:[%s216_s28 + $0x30] sm:$0xff]  ;;  %v267_v20 = vmul.f32 %v1013_v0, %v1013_v0  ;;  %v268_v21 = vmul.f32 %v1015_v1, %v1015_v1  ;;  %691 = vmatprep.subr.bf16.mxu0 %v863_v27  ;;  %683 = vmatprep.mubr.msk.f32.mxu0 %vm864_vm0, %v865_v30  ;;  %vm355_vm9 = vcmask 130112   ;;  %s242_s29 = scalar_lea.vmem [#allocation5], %s656_s25  ;;  %s667_s14 = sshll.u32 %s920_s22, 10 }
  0x3a   : > { %v1025_v6 = vld [vmem:[%s216_s28 + $0x38] sm:$0xff]  ;;  %v251_v7 = vadd.f32 %v1021_v4, %v1017_v2  ;;  %v1029_v8 = vld [vmem:[%s216_s28 + $0x10] sm:$0xff]  ;;  %v263_v14 = vmul.f32 %v1017_v2, %v1017_v2  ;;  %v264_v15 = vmul.f32 %v1021_v4, %v1021_v4  ;;  %v269_v17 = vmul.f32 %v1023_v5, %v1023_v5  ;;  %v335_v24 = vld [vmem:[%s1152_s1] sm:$0xff]  ;;  %686 = vmatprep.subr.mxu1 %v865_v30  ;;  %s576_s12 = sshll.u32 %s242_s29, 4  ;;  %s1105_s16 = scalar_lea.hbm %s1156_s5, %s667_s14  ;;  %s1100_s12 = int_to_ptr.vmem [resolvable:$true] %s576_s12 }
  0x3b   : > { %v1031_v9 = vld [vmem:[%s216_s28 + $0x18] sm:$0xff]  ;;  %258 = vadd.xlane.f32.xlu1 %v257_v3  ;;  %v260_v10 = vadd.f32 %v1025_v6, %v1023_v5  ;;  %v265_v11 = vmul.f32 %v1029_v8, %v1029_v8  ;;  %v270_v18 = vmul.f32 %v1025_v6, %v1025_v6  ;;  %v277_v23 = vadd.f32 %v268_v21, %v267_v20  ;;  %v336_v25 = vld [vmem:[%s1152_s1 + $0x8] sm:$0xff]  ;;  %v337_v26 = vld [vmem:[%s1152_s1 + $0x10] sm:$0xff]  ;;  %s563_s22 = scalar_lea.sflag [#allocation4], %s1003_s23  ;;  %s792_s8 = scalar_lea.vmem %s1100_s12, 1024 }
  0x3c   : > { %v266_v12 = vmul.f32 %v1031_v9, %v1031_v9  ;;  %252 = vadd.xlane.f32.xlu0 %v251_v7  ;;  %v254_v13 = vadd.f32 %v1031_v9, %v1029_v8  ;;  %v271_v19 = vadd.f32 %v264_v15, %v263_v14  ;;  %v692_v28 = vpack.c.bf16 %v336_v25, %v335_v24  ;;  %v338_v29 = vld [vmem:[%s1152_s1 + $0x18] sm:$0xff]  ;;  %p793_p6 = scmp.ne.s32.totalorder %s1100_s12, %s792_s8  ;;  %p1163_p11 = scmp.ne.s32.totalorder %s1160_s30, 0 }
  0x3d   : > { %v280_v22 = vadd.f32 %v270_v18, %v269_v17  ;;  %688 = vmatprep.mubr.msk.f32.mxu1 %vm864_vm0, %v865_v30  ;;  %v695_v31 = vpack.c.bf16 %v338_v29, %v337_v26  ;;  %v345_v61 = vand.u32 127, %v344_v57  ;;  %v1073_v62 = vshrl.u32 %v344_v57, 7  ;;  %s866_s7 = smov [#allocation5]  }
  0x3e   : > { %v274_v16 = vadd.f32 %v266_v12, %v265_v11  ;;  %693 = vmatpush3.bf16.msra.mxu0 %v692_v28  ;;  %vm362_vm10 = vcmask 195712   ;;  %vm369_vm11 = vcmask 261312   ;;  %vm371_vm12 = vcmask 261120   ;;  %p794_p12 = pnand %p793_p6, %p1163_p11  ;;  %s796_s9 = sshll.u32 %s866_s7, 4  ;;  %s797_s9 = int_to_ptr.vmem [resolvable:$false] %s796_s9 }
  0x3f   : > { %261 = vadd.xlane.f32.xlu1 %v260_v10  ;;  %694 = vmatprep.subr.bf16.mxu0 %v863_v27  ;;  %v350_v63 = vadd.s32 4294967288, %v345_v61  ;;  %v348_v11 = vsub.s32 %v345_v61, %v1073_v62  ;;  %v364_v12 = vadd.s32 4294967272, %v345_v61  ;;  %v357_v21 = vadd.s32 4294967280, %v345_v61  ;;  %s798_s10 = scalar_lea.vmem %s797_s9, 2048  ;;  %p799_p8 = scmp.lt.s32.totalorder %s1100_s12, %s797_s9 }
  0x40   : > { %255 = vadd.xlane.f32.xlu0 %v254_v13  ;;  %vm447_vm13 = vcmask 64512   ;;  %p795_p13 = pneg %p794_p12  ;;  %p800_p10 = scmp.lt.s32.totalorder %s798_s10, %s792_s8 }
  0x41   : > { %v353_v15 = vsub.s32 %v350_v63, %v1073_v62  ;;  %v367_v26 = vsub.s32 %v364_v12, %v1073_v62 }
  0x42   : > { %696 = vmatpush3.bf16.msra.mxu0 %v695_v31  ;;  %p801_p0 = por %p800_p10, %p799_p8 }
  0x43   : > { %275 = vadd.xlane.f32.xlu1 %v274_v16 }
  0x44   : > { %272 = vadd.xlane.f32.xlu0 %v271_v19  ;;  %p802_p2 = pnand %p801_p0, %p795_p13 }
  0x47   : > { %281 = vadd.xlane.f32.xlu1 %v280_v22 }
  0x48   : > { %278 = vadd.xlane.f32.xlu0 %v277_v23 }
  0xc8   : > { %v259_v32 = vpop.xlane.xlu1 %258 }
  0xc9   : > { %v253_v33 = vpop.xlane.xlu0 %252  ;;  %v1067_v43 = vmul.f32 0.00390625, %v259_v32 }
  0xca   : > { %v283_v36 = vmul.f32 0.00390625, %v253_v33 }
  0xcb   : > { %v293_v53 = vmul.f32 %v1067_v43, %v1067_v43 }
  0xcc   : > { %v262_v34 = vpop.xlane.xlu1 %261  ;;  %v291_v44 = vmul.f32 %v283_v36, %v283_v36 }
  0xcd   : > { %v256_v35 = vpop.xlane.xlu0 %255  ;;  %v1065_v39 = vmul.f32 0.00390625, %v262_v34  ;;  %v360_v34 = vsub.s32 %v357_v21, %v1073_v62 }
  0xce   : > { %v284_v37 = vmul.f32 0.00390625, %v256_v35 }
  0xcf   : > { %v294_v49 = vmul.f32 %v1065_v39, %v1065_v39 }
  0xd0   : > { %v276_v38 = vpop.xlane.xlu1 %275  ;;  %v292_v40 = vmul.f32 %v284_v37, %v284_v37 }
  0xd1   : > { %v288_v41 = vmul.f32 0.00390625, %v276_v38  ;;  %v273_v42 = vpop.xlane.xlu0 %272 }
  0xd2   : > { %v287_v45 = vmul.f32 0.00390625, %v273_v42 }
  0xd3   : > { %v296_v46 = vsub.f32 %v288_v41, %v292_v40 }
  0xd4   : > { %v295_v47 = vsub.f32 %v287_v45, %v291_v44  ;;  %v282_v48 = vpop.xlane.xlu1 %281 }
  0xd5   : > { %v300_v50 = vmax.f32 %v296_v46, 0.0  ;;  %v290_v51 = vmul.f32 0.00390625, %v282_v48  ;;  %v279_v52 = vpop.xlane.xlu0 %278 }
  0xd6   : > { %v299_v54 = vmax.f32 %v295_v47, 0.0  ;;  %v289_v55 = vmul.f32 0.00390625, %v279_v52  ;;  %v445_v47 = vld [vmem:[%s1154_s3] sm:$0xff] }
  0xd7   : > { %750 = vrsqrt.f32 %v300_v50  ;;  %v298_v56 = vsub.f32 %v290_v51, %v294_v49  ;;  %vm312_vm1 = vcmp.eq.f32.partialorder %v300_v50, inf  ;;  %v315_v14 = vand.u32 2147483648, %v300_v50  ;;  %687 = vmatpush3.msra.mxu1 %v445_v47  ;;  %v446_v51 = vld [vmem:[%s1155_s4] sm:$0x1] }
  0xd8   : > { %752 = vrsqrt.f32 %v299_v54  ;;  %v297_v58 = vsub.f32 %v289_v55, %v293_v53  ;;  %vm305_vm2 = vcmp.eq.f32.partialorder %v299_v54, inf  ;;  %v308_v16 = vand.u32 2147483648, %v299_v54 }
  0xd9   : > { %v302_v59 = vmax.f32 %v298_v56, 0.0  ;;  %vm314_vm3 = vcmp.eq.f32.partialorder %v300_v50, 0.0  ;;  %vm307_vm4 = vcmp.eq.f32.partialorder %v299_v54, 0.0 }
  0xda   : > { %v301_v60 = vmax.f32 %v297_v58, 0.0  ;;  %v529_v58 = vsub.s32 0, %v1073_v62 }
  0xdb   : > { %754 = vrsqrt.f32 %v302_v59  ;;  %vm326_vm5 = vcmp.eq.f32.partialorder %v302_v59, inf  ;;  %v329_v28 = vand.u32 2147483648, %v302_v59  ;;  %vm328_vm7 = vcmp.eq.f32.partialorder %v302_v59, 0.0 }
  0xdc   : > { %756 = vrsqrt.f32 %v301_v60  ;;  %vm319_vm6 = vcmp.eq.f32.partialorder %v301_v60, inf  ;;  %v322_v30 = vand.u32 2147483648, %v301_v60  ;;  %vm321_vm8 = vcmp.eq.f32.partialorder %v301_v60, 0.0 }
  0xe1   : > { %v751_v3 = vpop.eup %750 }
  0xe2   : > { %v753_v7 = vpop.eup %752  ;;  %v311_v10 = vmul.f32 %v751_v3, %v300_v50 }
  0xe3   : > { %v304_v13 = vmul.f32 %v753_v7, %v299_v54 }
  0xe4   : > { %v313_v17 = vsel %vm312_vm1, %v300_v50, %v311_v10 }
  0xe5   : > { %v755_v18 = vpop.eup %754  ;;  %v306_v19 = vsel %vm305_vm2, %v299_v54, %v304_v13  ;;  %v316_v20 = vsel %vm314_vm3, %v315_v14, %v313_v17 }
  0xe6   : > { %v757_v22 = vpop.eup %756  ;;  %v309_v23 = vsel %vm307_vm4, %v308_v16, %v306_v19  ;;  %v325_v24 = vmul.f32 %v755_v18, %v302_v59  ;;  %v332_v25 = vadd.f32 %v316_v20, %v284_v37 }
  0xe7   : > { %v318_v27 = vmul.f32 %v757_v22, %v301_v60  ;;  %v331_v29 = vadd.f32 %v309_v23, %v283_v36 }
  0xe8   : > { %v327_v31 = vsel %vm326_vm5, %v302_v59, %v325_v24  ;;  %v354_v37 = vrot.slane %v332_v25, %v353_v15 }
  0xe9   : > { %v320_v32 = vsel %vm319_vm6, %v301_v60, %v318_v27  ;;  %v330_v33 = vsel %vm328_vm7, %v329_v28, %v327_v31  ;;  %v349_v40 = vrot.slane %v331_v29, %v348_v11 }
  0xea   : > { %v323_v35 = vsel %vm321_vm8, %v322_v30, %v320_v32  ;;  %v334_v38 = vadd.f32 %v330_v33, %v1065_v39  ;;  %v339_v39 = vld [vmem:[%s1153_s2] sm:$0x1] }
  0xeb   : > { %v333_v41 = vadd.f32 %v323_v35, %v1067_v43  ;;  %v356_v44 = vsel %vm355_vm9, %v354_v37, %v349_v40 }
  0xec   : > { %v368_v42 = vrot.slane %v334_v38, %v367_v26 }
  0xed   : > { %v361_v36 = vrot.slane %v333_v41, %v360_v34 }
  0xef   : > { %v363_v45 = vsel %vm362_vm10, %v361_v36, %v356_v44 }
  0xf0   : > { %v370_v46 = vsel %vm369_vm11, %v368_v42, %v363_v45 }
  0xf1   : > { %684 = vmatmul.mubr.msk.f32.vlgmr.msra.gmra.mrb[0].mxu0 %vm371_vm12, %v370_v46 }
 0x1c4   : > { %v440_v43 = vpop.f32.mrb[0].mxu0 }
 0x1c5   : > { %v441_v48 = vadd.f32 %v440_v43, %v339_v39  ;;  %v685_v49 = vpop.f32.mrb[1].mxu0 }
 0x1c7   : > { %v444_v50 = vmax.f32 %v441_v48, 0.0 }
 0x1c9   : > { %689 = vmatmul.mubr.msk.f32.vlgmr.msra.gmra.mrb[0].mxu1 %vm447_vm13, %v444_v50 }
 0x29c   : > { %v517_v52 = vpop.f32.mrb[0].mxu1 }
 0x29d   : > { %v518_v53 = vadd.f32 %v517_v52, %v446_v51  ;;  %v690_v54 = vpop.f32.mrb[1].mxu1 }
 0x29f   : > { %v660_v55 = vmul.f32 -1.442695, %v518_v53 }
 0x2a1   : > { %758 = vpow2.f32 %v660_v55 }
 0x2ab   : > { %v759_v56 = vpop.eup %758 }
 0x2ac   : > { %v524_v57 = vadd.f32 1.0, %v759_v56 }
 0x2ae   : > { %760 = vrcp.f32 %v524_v57 }
 0x2b8   : > { %v761_v59 = vpop.eup %760 }
 0x2b9   : > { %v530_v60 = vrot.slane %v761_v59, %v529_v58 }
 0x2bb   : > { %536 = vbcast.lane.b32.xlu1 %v530_v60, 264  ;;  %532 = vbcast.lane.b32.xlu0 %v530_v60, 256 }
 0x2bf   : > { %540 = vbcast.lane.b32.xlu1 %v530_v60, 272 }
 0x2c3   : > { %544 = vbcast.lane.b32.xlu1 %v530_v60, 280 }
 0x32d   : > { %v537_v61 = vpop.permute.xlu1 %536  ;;  %v533_v63 = vpop.permute.xlu0 %532 }
 0x32e   : > { %v548_v3 = vmul.f32 %v537_v61, %v1029_v8  ;;  %v549_v7 = vmul.f32 %v537_v61, %v1031_v9  ;;  %v546_v10 = vmul.f32 %v533_v63, %v1017_v2  ;;  %v547_v11 = vmul.f32 %v533_v63, %v1021_v4 }
 0x330   : > { %556 = vst [vmem:[%s242_s29 + $0x10] sm:$0xff] %v548_v3  ;;  %557 = vst [vmem:[%s242_s29 + $0x18] sm:$0xff] %v549_v7 }
 0x331   : > { %554 = vst [vmem:[%s242_s29] sm:$0xff] %v546_v10  ;;  %555 = vst [vmem:[%s242_s29 + $0x8] sm:$0xff] %v547_v11  ;;  %v541_v62 = vpop.permute.xlu1 %540 }
 0x332   : > { %v550_v12 = vmul.f32 %v541_v62, %v1013_v0  ;;  %v551_v8 = vmul.f32 %v541_v62, %v1015_v1 }
 0x334   : > { %558 = vst [vmem:[%s242_s29 + $0x20] sm:$0xff] %v550_v12  ;;  %559 = vst [vmem:[%s242_s29 + $0x28] sm:$0xff] %v551_v8 }
 0x335   : > { %v545_v2 = vpop.permute.xlu1 %544 }
 0x336   : > { %v552_v4 = vmul.f32 %v545_v2, %v1023_v5  ;;  %v553_v0 = vmul.f32 %v545_v2, %v1025_v6 }
 0x338   : > { %560 = vst [vmem:[%s242_s29 + $0x30] sm:$0xff] %v552_v4  ;;  %561 = vst [vmem:[%s242_s29 + $0x38] sm:$0xff] %v553_v0 }
 0x339   : > { %805 = shalt.err (!%p802_p2)
}
 0x33a   : > { %s806_s11 = scalar_lea.hbm %s1105_s16, 1024  ;;  %s810_s26 = scalar_lea.hbm %s1156_s5, 2048 }
 0x33b   : > { %p807_p4 = scmp.ne.s32.totalorder %s1105_s16, %s806_s11  ;;  %p811_p9 = scmp.lt.u32.totalorder %s1105_s16, %s1156_s5 }
 0x33c   : > { %p812_p1 = scmp.lt.u32.totalorder %s810_s26, %s806_s11  ;;  %p814_p6 = scmp.lt.u32.totalorder %s806_s11, %s1105_s16 }
 0x33d   : > { %p808_p5 = pnand %p807_p4, %p1163_p11 }
 0x33e   : > { %p813_p3 = por %p812_p1, %p811_p9 }
 0x33f   : > { %p809_p7 = pneg %p808_p5 }
 0x340   : > { %p815_p12 = por %p814_p6, %p813_p3 }
 0x342   : > { %p816_p13 = pnand %p815_p12, %p809_p7 }
 0x344   : > { %819 = shalt.err (!%p816_p13)
}
 0x345   : > { %s867_s14 = smov 256   ;;  %s868_s25 = smov 16  }
 0x346   : > { %699 = dma.vmem_to_hbm [thread:$0]  (%p1163_p11), %s1100_s12, 1024, %s1105_s16, %s563_s22, %s867_s14, %s867_s14, %s868_s25  }
 0x347 PF: > { %s591_s15 = sand.u32 1, %s846_s18   ;;  %p1164_p8 = scmp.ne.s32.totalorder %s1161_s6, 0 }
 0x348   : > { %p1165_p10 = scmp.ge.s32.totalorder %s858_s21, 2  ;;  %s592_s8 = scalar_lea.sflag [#allocation4], %s591_s15 }
 0x34a   : > { %p706_p0 = pnand %p1165_p10, %p1164_p8 }
 0x34c   : > { %841 = dma.done.wait (!%p706_p0), %s592_s8, 1024  }
 0x34d   : > { %843 = vsyncadd (!%p706_p0), %s592_s8, 4294966272  ;;  %p18_p2 = scmp.ge.s32.totalorder %s924_s24, 4   ;;  %s1166_s18 = smov %s850_s19 }
 0x34e   : > { %s1167_s19 = smov %s854_s20  ;;  %s1168_s20 = smov %s936_s27 }
 0x34f   : > { %s1169_s21 = smov %s924_s24  ;;  %20 = sbr.rel (!%p18_p2) target bundleno = 5 (0x5), region = 85 }
 0x356   :  { %597 = vsyncpa [#allocation3], 1 }
 0x357   :  { %599 = vsyncpa [#allocation3 + $0x1], 1 }
 0x358   :  { %600 = vsyncpa [#allocation4], 1 }
 0x359   :  { %602 = vsyncpa [#allocation4 + $0x1], 1 }

</bundles_post_ra>
